<compile_context>
chip_gen: v6e
topology: v6e:2x2x1
jax: 0.10.0
libtpu: 0.0.40
codegen_flags: <defaults>
</compile_context>

<pallas_src>
import math

import jax
import jax.numpy as jnp
from jax.experimental import pallas as pl
from jax.experimental.pallas import tpu as pltpu


def _get_pad(size: int, multiple: int):
    new_size = int(math.ceil(size / multiple) * multiple)
    pad = new_size - size
    left = pad // 2
    return left, pad - left


# Only take the manual-DMA path when each interior row is at least this long,
# so DMA descriptors are not dominated by per-row overhead.
_DMA_MIN_ROW_BYTES = 512
_FALLBACK_VMEM_BUDGET = 12 << 20
_FALLBACK_VMEM_LIMIT = 32 << 20


def _vmem_params():
    """(per-step working-set budget, vmem_limit_bytes), generation aware."""
    try:
        phys = int(pltpu.get_tpu_info().vmem_capacity_bytes)
    except Exception:
        return _FALLBACK_VMEM_BUDGET, _FALLBACK_VMEM_LIMIT
    # v5e/v6e (128 MiB physical) -> ~40 MiB working set; v7x (64 MiB) -> ~21 MiB.
    budget = min(phys // 3, 40 << 20)
    limit = max(32 << 20, min(phys - (8 << 20), budget * 2 + (8 << 20)))
    return budget, limit


def _pick_channel_block(nc, ws_bytes, budget, *, sublane=1, need_divisor=False,
                        min_steps=8, min_block_bytes=1 << 20):
    """Pick the per-step channel block Cb.

    ws_bytes = per-channel working-set bytes (double-buffering already folded
    in by the caller).  Targets >= min(min_steps, nc) grid steps so the DMA
    pipeline overlaps and a 2-TC chip can split the grid, while keeping each
    block >= ~1 MiB and under the VMEM budget.
    """
    ws_bytes = max(int(ws_bytes), 1)
    cb_vmem = max(1, budget // ws_bytes)
    cb_steps = max(1, nc // max(1, min(min_steps, nc)))
    cb_floor = max(1, -(-min_block_bytes // ws_bytes))     # ceil div
    cb = max(cb_steps, cb_floor)
    cb = max(1, min(cb, cb_vmem, nc))
    if sublane > 1 and cb != nc:
        # Cb is the second-minor dim of the flattened block -> keep it tileable.
        if nc <= sublane:
            cb = nc
        else:
            cb = min(nc, max(sublane, (cb // sublane) * sublane))
    if need_divisor and nc % cb:
        while cb > 1 and nc % cb:
            cb -= 1
    return cb


def _pad_h_only(x2, H, W, ph_l, ph_r, budget, vmem_limit, cost):
    """Only H is padded: flatten spatial dims so every store is lane-dense."""
    NC, HW = x2.shape
    Hp = H + ph_l + ph_r
    itemsize = jnp.dtype(x2.dtype).itemsize
    sub = max(8, 32 // itemsize)
    ws = 2 * (HW + Hp * W) * itemsize                      # in + out, double-buffered
    Cb = _pick_channel_block(NC, ws, budget, sublane=sub)
    grid = (pl.cdiv(NC, Cb),)

    def kernel(x_ref, o_ref):
        dt = o_ref.dtype
        if ph_l:
            o_ref[:, 0:ph_l * W] = jnp.zeros((Cb, ph_l * W), dt)
        o_ref[:, ph_l * W:ph_l * W + HW] = x_ref[...]
        if ph_r:
            o_ref[:, ph_l * W + HW:Hp * W] = jnp.zeros((Cb, ph_r * W), dt)

    return pl.pallas_call(
        kernel,
        out_shape=jax.ShapeDtypeStruct((NC, Hp * W), x2.dtype),
        grid=grid,
        in_specs=[pl.BlockSpec((Cb, HW), lambda i: (i, 0))],
        out_specs=pl.BlockSpec((Cb, Hp * W), lambda i: (i, 0)),
        compiler_params=pltpu.CompilerParams(
            dimension_semantics=("parallel",),
            vmem_limit_bytes=vmem_limit),
        cost_estimate=cost,
    )(x2)


def _pad_vpu(x2, ph_l, ph_r, pw_l, pw_r, budget, vmem_limit, cost):
    """General path for narrow rows: fused W-pad (lane concat) + <=3 wide stores."""
    NC, H, W = x2.shape
    Hp, Wp = H + ph_l + ph_r, W + pw_l + pw_r
    itemsize = jnp.dtype(x2.dtype).itemsize
    ws = 2 * (H * W + Hp * Wp) * itemsize
    Cb = _pick_channel_block(NC, ws, budget)
    grid = (pl.cdiv(NC, Cb),)

    def kernel(x_ref, o_ref):
        dt = o_ref.dtype
        blk = x_ref[...]                                   # (Cb, H, W)
        if pw_l or pw_r:
            parts = []
            if pw_l:
                parts.append(jnp.zeros((Cb, H, pw_l), dt))
            parts.append(blk)
            if pw_r:
                parts.append(jnp.zeros((Cb, H, pw_r), dt))
            blk = jnp.concatenate(parts, axis=2)           # (Cb, H, Wp); XLU lane shift
        if ph_l:
            o_ref[:, 0:ph_l, :] = jnp.zeros((Cb, ph_l, Wp), dt)
        o_ref[:, ph_l:ph_l + H, :] = blk                   # single full-width store
        if ph_r:
            o_ref[:, ph_l + H:Hp, :] = jnp.zeros((Cb, ph_r, Wp), dt)

    return pl.pallas_call(
        kernel,
        out_shape=jax.ShapeDtypeStruct((NC, Hp, Wp), x2.dtype),
        grid=grid,
        in_specs=[pl.BlockSpec((Cb, H, W), lambda i: (i, 0, 0))],
        out_specs=pl.BlockSpec((Cb, Hp, Wp), lambda i: (i, 0, 0)),
        compiler_params=pltpu.CompilerParams(
            dimension_semantics=("parallel",),
            vmem_limit_bytes=vmem_limit),
        cost_estimate=cost,
    )(x2)


def _pad_dma(x2, ph_l, ph_r, pw_l, pw_r, budget, vmem_limit, cost):
    """Wide-row path: no VPU stores on bulk data.  Output stays in HBM; the
    input block is DMA'd straight into the centered window; the four border
    strips are DMA'd from small VMEM zero scratches (exact shapes, no source
    slicing)."""
    NC, H, W = x2.shape
    Hp, Wp = H + ph_l + ph_r, W + pw_l + pw_r
    dtype = x2.dtype
    itemsize = jnp.dtype(dtype).itemsize

    # (scratch_shape(Cb), dst_window(row0, Cb)) for every non-empty border strip.
    strips = []
    if ph_l:
        strips.append((lambda cb: (cb, ph_l, Wp),
                       lambda r0, cb: (pl.ds(r0, cb), pl.ds(0, ph_l), pl.ds(0, Wp))))
    if ph_r:
        strips.append((lambda cb: (cb, ph_r, Wp),
                       lambda r0, cb: (pl.ds(r0, cb), pl.ds(ph_l + H, ph_r), pl.ds(0, Wp))))
    if pw_l:
        strips.append((lambda cb: (cb, H, pw_l),
                       lambda r0, cb: (pl.ds(r0, cb), pl.ds(ph_l, H), pl.ds(0, pw_l))))
    if pw_r:
        strips.append((lambda cb: (cb, H, pw_r),
                       lambda r0, cb: (pl.ds(r0, cb), pl.ds(ph_l, H), pl.ds(pw_l + W, pw_r))))

    strip_elems = (ph_l + ph_r) * Wp + H * (pw_l + pw_r)
    ws = (2 * H * W + strip_elems) * itemsize              # dbl-buffered input + scratches
    # Exact divisor: manual DMAs must never write past the real output rows.
    Cb = _pick_channel_block(NC, ws, budget, need_divisor=True)
    steps = NC // Cb
    n_dma = 1 + len(strips)

    def kernel(x_ref, o_ref, *scratch):
        sem = scratch[-1]
        zrefs = scratch[:-1]
        row0 = pl.multiple_of(pl.program_id(0) * Cb, Cb)
        copies = [pltpu.make_async_copy(
            x_ref,
            o_ref.at[pl.ds(row0, Cb), pl.ds(ph_l, H), pl.ds(pw_l, W)],
            sem.at[0])]
        for j, (zref, (_, dst_fn)) in enumerate(zip(zrefs, strips)):
            # Re-zero every step: cheap (small strips) and megacore-safe.
            zref[...] = jnp.zeros(zref.shape, zref.dtype)
            copies.append(pltpu.make_async_copy(zref, o_ref.at[dst_fn(row0, Cb)],
                                                sem.at[j + 1]))
        for c in copies:
            c.start()
        for c in copies:
            c.wait()

    scratch_shapes = [pltpu.VMEM(shape_fn(Cb), dtype) for shape_fn, _ in strips]
    scratch_shapes.append(pltpu.SemaphoreType.DMA((n_dma,)))

    return pl.pallas_call(
        kernel,
        out_shape=jax.ShapeDtypeStruct((NC, Hp, Wp), dtype),
        grid=(steps,),
        in_specs=[pl.BlockSpec((Cb, H, W), lambda i: (i, 0, 0))],
        out_specs=pl.BlockSpec(memory_space=pl.ANY),
        scratch_shapes=tuple(scratch_shapes),
        compiler_params=pltpu.CompilerParams(
            dimension_semantics=("parallel",),
            vmem_limit_bytes=vmem_limit),
        cost_estimate=cost,
    )(x2)


def center_padding(x: jax.Array, multiple: int) -> jax.Array:
    """Pallas implementation of CenterPadding.forward for NCHW inputs."""
    if x.ndim != 4:
        raise ValueError("center_padding expects an NCHW input")
    N, C, H, W = x.shape
    ph_l, ph_r = _get_pad(H, multiple)
    pw_l, pw_r = _get_pad(W, multiple)
    Hp, Wp = H + ph_l + ph_r, W + pw_l + pw_r

    # Fast path: nothing to pad.
    if ph_l == ph_r == pw_l == pw_r == 0:
        return x

    NC = N * C
    itemsize = jnp.dtype(x.dtype).itemsize
    budget, vmem_limit = _vmem_params()
    cost = pl.CostEstimate(flops=0, transcendentals=0,
                           bytes_accessed=(NC * H * W + NC * Hp * Wp) * itemsize)

    if pw_l == 0 and pw_r == 0:
        out = _pad_h_only(x.reshape(NC, H * W), H, W, ph_l, ph_r,
                          budget, vmem_limit, cost)
    elif W * itemsize >= _DMA_MIN_ROW_BYTES:
        out = _pad_dma(x.reshape(NC, H, W), ph_l, ph_r, pw_l, pw_r,
                       budget, vmem_limit, cost)
    else:
        out = _pad_vpu(x.reshape(NC, H, W), ph_l, ph_r, pw_l, pw_r,
                       budget, vmem_limit, cost)
    return out.reshape(N, C, Hp, Wp)


if __name__ == "__main__":
    key = jax.random.PRNGKey(0)
    k1, k2, k3 = jax.random.split(key, 3)

    def ref_pad(x, multiple):
        _, _, h, w = x.shape
        ph_l, ph_r = _get_pad(h, multiple)
        pw_l, pw_r = _get_pad(w, multiple)
        return jnp.pad(x, ((0, 0), (0, 0), (ph_l, ph_r), (pw_l, pw_r)))

    def check(x, multiple):
        out = jax.block_until_ready(center_padding(x, multiple))
        ref = ref_pad(x, multiple)
        assert out.shape == ref.shape, (out.shape, ref.shape)
        assert out.dtype == x.dtype
        assert bool(jnp.array_equal(out, ref)), (
            f"mismatch vs reference (multiple={multiple}, shape={x.shape})")

    # Primary shape from the spec: NCHW = (2, 4, 16, 16).
    x = jax.random.normal(k1, (2, 4, 16, 16), dtype=jnp.float32)
    check(x, 7)     # VPU path, asymmetric pads (16 -> 21: 2/3 each side)
    check(x, 24)    # VPU path, symmetric pads (16 -> 24: 4/4)
    out_id = jax.block_until_ready(center_padding(x, 8))   # no-pad fast path
    assert bool(jnp.array_equal(out_id, x)), "mismatch on no-pad fast path"

    # Lane-dense H-only path (13 -> 16 rows, W untouched).
    xh = jax.random.normal(k2, (2, 4, 13, 16), dtype=jnp.float32)
    check(xh, 8)

    # Manual-DMA path: 160 * 4 B = 640 B rows >= 512 B threshold.
    xw = jax.random.normal(k3, (2, 4, 16, 160), dtype=jnp.float32)
    check(xw, 9)    # all four border strips non-empty
    check(xw, 7)    # asymmetric; left W-pad is empty

    print("KERNEL_OK")
</pallas_src>

<mosaic_0001>
module attributes {stable_mosaic.version = 11 : i64} {
  func.func @kernel(%arg0: i32, %arg1: memref<8x16x16xf32, #tpu.memory_space<vmem>>, %arg2: memref<8x21x21xf32, #tpu.memory_space<vmem>>) attributes {dimension_semantics = [#tpu.dimension_semantics<parallel>], iteration_bounds = array<i64: 1>, scalar_prefetch = 0 : i64, scratch_operands = 0 : i64, tpu.core_type = #tpu.core_type<tc>, window_params = [{transform_indices = @transform_0, window_bounds = array<i64: 8, 16, 16>}, {transform_indices = @transform_1, window_bounds = array<i64: 8, 21, 21>}]} {
    %c0 = arith.constant 0 : index
    %c0_0 = arith.constant 0 : index
    %c0_1 = arith.constant 0 : index
    %0 = vector.load %arg1[%c0, %c0_0, %c0_1] : memref<8x16x16xf32, #tpu.memory_space<vmem>>, vector<8x16x16xf32>
    %cst = arith.constant 0.000000e+00 : f32
    %1 = vector.broadcast %cst : f32 to vector<8x16x2xf32>
    %cst_2 = arith.constant 0.000000e+00 : f32
    %2 = vector.broadcast %cst_2 : f32 to vector<8x16x3xf32>
    %3 = tpu.concatenate %1, %0, %2 in 2 : vector<8x16x2xf32>, vector<8x16x16xf32>, vector<8x16x3xf32> -> vector<8x16x21xf32>
    %cst_3 = arith.constant 0.000000e+00 : f32
    %4 = vector.broadcast %cst_3 : f32 to vector<8x2x21xf32>
    %c0_4 = arith.constant 0 : index
    %c0_5 = arith.constant 0 : index
    %c0_6 = arith.constant 0 : index
    %5 = vector.load %arg2[%c0_4, %c0_5, %c0_6] : memref<8x21x21xf32, #tpu.memory_space<vmem>>, vector<8x2x21xf32>
    tpu.vector_store %arg2[%c0_4, %c0_5, %c0_6], %4 {strides = array<i32>} : memref<8x21x21xf32, #tpu.memory_space<vmem>>, vector<8x2x21xf32>,
    %c0_7 = arith.constant 0 : index
    %c2 = arith.constant 2 : index
    %c0_8 = arith.constant 0 : index
    %6 = vector.load %arg2[%c0_7, %c2, %c0_8] : memref<8x21x21xf32, #tpu.memory_space<vmem>>, vector<8x16x21xf32>
    tpu.vector_store %arg2[%c0_7, %c2, %c0_8], %3 {strides = array<i32>} : memref<8x21x21xf32, #tpu.memory_space<vmem>>, vector<8x16x21xf32>,
    %cst_9 = arith.constant 0.000000e+00 : f32
    %7 = vector.broadcast %cst_9 : f32 to vector<8x3x21xf32>
    %c0_10 = arith.constant 0 : index
    %c18 = arith.constant 18 : index
    %c0_11 = arith.constant 0 : index
    %8 = vector.load %arg2[%c0_10, %c18, %c0_11] : memref<8x21x21xf32, #tpu.memory_space<vmem>>, vector<8x3x21xf32>
    tpu.vector_store %arg2[%c0_10, %c18, %c0_11], %7 {strides = array<i32>} : memref<8x21x21xf32, #tpu.memory_space<vmem>>, vector<8x3x21xf32>,
    return
  }
  func.func @transform_0(%arg0: i32) -> (i32, i32, i32) {
    %c0_i32 = arith.constant 0 : i32
    %c0_i32_0 = arith.constant 0 : i32
    %c0_i32_1 = arith.constant 0 : i32
    return %arg0, %c0_i32, %c0_i32_0 : i32, i32, i32
  }
  func.func @transform_1(%arg0: i32) -> (i32, i32, i32) {
    %c0_i32 = arith.constant 0 : i32
    %c0_i32_0 = arith.constant 0 : i32
    %c0_i32_1 = arith.constant 0 : i32
    return %arg0, %c0_i32, %c0_i32_0 : i32, i32, i32
  }
}

</mosaic_0001>

<bundles_post_ra>
// kernel: tpu_custom_call.1
= control target key start
LH: loop header
LB: loop body
LE: loop exit
PB: predicated region body
PF: predicated region fallthrough
CT: control target
= control target key end

     0   :  { %6 = vsyncpa [#allocation3], 0  ;;  %s203_s6 = smov [#allocation2]   ;;  %s373_s0 = inlined_call_operand.hbm [shape: f32[8,16,16], index: 0, kind: input, shape index: {}]   ;;  %s374_s1 = inlined_call_operand.vmem [shape: f32[8,21,21], index: 1, kind: output, shape index: {}]  }
   0x1   :  { %s12_s7 = sshll.u32 %s203_s6, 4  ;;  %s13_s7 = int_to_ptr.vmem [resolvable:$true] %s12_s7 }
   0x2   :  { %s189_s8 = scalar_lea.vmem %s13_s7, 2048  ;;  %p194_p1 = scmp.lt.s32.totalorder %s13_s7, %s13_s7 }
   0x3   :  { %p190_p0 = scmp.ne.s32.totalorder %s13_s7, %s189_s8  ;;  %p195_p2 = scmp.lt.s32.totalorder %s189_s8, %s189_s8 }
   0x5   :  { %p196_p3 = por %p195_p2, %p194_p1 }
   0x7   :  { %p197_p4 = pnand %p196_p3, %p190_p0 }
   0x9   :  { %200 = shalt.err (!%p197_p4)
}
   0xa   :  { %s204_s9 = smov 128   ;;  %s205_s10 = smov 8  }
   0xb   :  { %18 = dma.hbm_to_vmem [thread:$0]  %s373_s0, 2048, %s13_s7, [#allocation3], %s204_s9, %s204_s9, %s205_s10  }
   0xc   :  { %201 = dma.done.wait [#allocation3], 2048  }
   0xd   :  { %202 = vsyncadd [#allocation3], 4294965248  ;;  %vm136_vm0 = vcmask 164864   ;;  %vm162_vm1 = vcmask 165888   ;;  %v206_v0 = vmov 0.0   ;;  %v24_v1 = vld [vmem:[#allocation2 + $0x10] sm:$0xff] }
   0xe   :  { %137 = vst.msk [vmem:[%s374_s1] sm:$0x3] %vm136_vm0, %v206_v0  ;;  %138 = vst.msk [vmem:[%s374_s1 + $0x18] sm:$0x3] %vm136_vm0, %v206_v0  ;;  %v22_v2 = vld [vmem:[#allocation2] sm:$0xff]  ;;  %s207_s15 = smov 2  }
   0xf   :  { %139 = vst.msk [vmem:[%s374_s1 + $0x30] sm:$0x3] %vm136_vm0, %v206_v0  ;;  %140 = vst.msk [vmem:[%s374_s1 + $0x48] sm:$0x3] %vm136_vm0, %v206_v0  ;;  %58 = vrot.lane.b32.xlu1 %v24_v1, %s207_s15  ;;  %54 = vrot.lane.b32.xlu0 %v22_v2, %s207_s15  ;;  %v25_v3 = vld [vmem:[#allocation2 + $0x18] sm:$0xff]  ;;  %v23_v4 = vld [vmem:[#allocation2 + $0x8] sm:$0xff] }
  0x10   :  { %141 = vst.msk [vmem:[%s374_s1 + $0x60] sm:$0x3] %vm136_vm0, %v206_v0  ;;  %142 = vst.msk [vmem:[%s374_s1 + $0x78] sm:$0x3] %vm136_vm0, %v206_v0  ;;  %v27_v5 = vld [vmem:[#allocation2 + $0x28] sm:$0xff]  ;;  %v26_v6 = vld [vmem:[#allocation2 + $0x20] sm:$0xff] }
  0x11   :  { %143 = vst.msk [vmem:[%s374_s1 + $0x90] sm:$0x3] %vm136_vm0, %v206_v0  ;;  %144 = vst.msk [vmem:[%s374_s1 + $0xa8] sm:$0x3] %vm136_vm0, %v206_v0  ;;  %v29_v7 = vld [vmem:[#allocation2 + $0x38] sm:$0xff]  ;;  %v28_v8 = vld [vmem:[#allocation2 + $0x30] sm:$0xff] }
  0x12   :  { %163 = vst.msk [vmem:[%s374_s1 + $0x12] sm:$0x7] %vm162_vm1, %v206_v0  ;;  %164 = vst.msk [vmem:[%s374_s1 + $0x2a] sm:$0x7] %vm162_vm1, %v206_v0  ;;  %v31_v9 = vld [vmem:[#allocation2 + $0x48] sm:$0xff]  ;;  %v30_v10 = vld [vmem:[#allocation2 + $0x40] sm:$0xff] }
  0x13   :  { %165 = vst.msk [vmem:[%s374_s1 + $0x42] sm:$0x7] %vm162_vm1, %v206_v0  ;;  %166 = vst.msk [vmem:[%s374_s1 + $0x5a] sm:$0x7] %vm162_vm1, %v206_v0  ;;  %60 = vrot.lane.b32.xlu1 %v25_v3, %s207_s15  ;;  %56 = vrot.lane.b32.xlu0 %v23_v4, %s207_s15  ;;  %v33_v11 = vld [vmem:[#allocation2 + $0x58] sm:$0xff]  ;;  %v32_v12 = vld [vmem:[#allocation2 + $0x50] sm:$0xff] }
  0x14   :  { %167 = vst.msk [vmem:[%s374_s1 + $0x72] sm:$0x7] %vm162_vm1, %v206_v0  ;;  %168 = vst.msk [vmem:[%s374_s1 + $0x8a] sm:$0x7] %vm162_vm1, %v206_v0  ;;  %v35_v13 = vld [vmem:[#allocation2 + $0x68] sm:$0xff]  ;;  %v34_v14 = vld [vmem:[#allocation2 + $0x60] sm:$0xff] }
  0x15   :  { %169 = vst.msk [vmem:[%s374_s1 + $0xa2] sm:$0x7] %vm162_vm1, %v206_v0  ;;  %170 = vst.msk [vmem:[%s374_s1 + $0xba] sm:$0x7] %vm162_vm1, %v206_v0  ;;  %v37_v15 = vld [vmem:[#allocation2 + $0x78] sm:$0xff]  ;;  %v36_v16 = vld [vmem:[#allocation2 + $0x70] sm:$0xff] }
  0x16   :  { %vm102_vm2 = vcmask 15360   ;;  %vm119_vm3 = vcmask 146432   ;;  %vm145_vm4 = vcmask 171008  }
  0x17   :  { %64 = vrot.lane.b32.xlu1 %v27_v5, %s207_s15  ;;  %62 = vrot.lane.b32.xlu0 %v26_v6, %s207_s15 }
  0x1b   :  { %68 = vrot.lane.b32.xlu1 %v29_v7, %s207_s15  ;;  %66 = vrot.lane.b32.xlu0 %v28_v8, %s207_s15 }
  0x1f   :  { %72 = vrot.lane.b32.xlu1 %v31_v9, %s207_s15  ;;  %70 = vrot.lane.b32.xlu0 %v30_v10, %s207_s15 }
  0x23   :  { %76 = vrot.lane.b32.xlu1 %v33_v11, %s207_s15  ;;  %74 = vrot.lane.b32.xlu0 %v32_v12, %s207_s15 }
  0x27   :  { %80 = vrot.lane.b32.xlu1 %v35_v13, %s207_s15  ;;  %78 = vrot.lane.b32.xlu0 %v34_v14, %s207_s15 }
  0x2b   :  { %84 = vrot.lane.b32.xlu1 %v37_v15, %s207_s15  ;;  %82 = vrot.lane.b32.xlu0 %v36_v16, %s207_s15 }
  0x81   :  { %v59_v17 = vpop.permute.xlu1 %58  ;;  %v55_v18 = vpop.permute.xlu0 %54 }
  0x82   :  { %v105_v19 = vsel %vm102_vm2, 0.0, %v59_v17  ;;  %v103_v20 = vsel %vm102_vm2, 0.0, %v55_v18 }
  0x83   :  { %v122_v21 = vsel %vm119_vm3, %v105_v19, 0.0  ;;  %v120_v22 = vsel %vm119_vm3, %v103_v20, 0.0 }
  0x84   :  { %148 = vst.msk [vmem:[%s374_s1 + $0x1a] sm:$0xff] %vm145_vm4, %v122_v21  ;;  %146 = vst.msk [vmem:[%s374_s1 + $0x2] sm:$0xff] %vm145_vm4, %v120_v22 }
  0x85   :  { %v61_v23 = vpop.permute.xlu1 %60  ;;  %v57_v24 = vpop.permute.xlu0 %56 }
  0x86   :  { %v106_v25 = vsel %vm102_vm2, 0.0, %v61_v23  ;;  %v104_v26 = vsel %vm102_vm2, 0.0, %v57_v24 }
  0x87   :  { %v123_v27 = vsel %vm119_vm3, %v106_v25, 0.0  ;;  %v121_v28 = vsel %vm119_vm3, %v104_v26, 0.0 }
  0x88   :  { %149 = vst.msk [vmem:[%s374_s1 + $0x22] sm:$0xff] %vm145_vm4, %v123_v27  ;;  %147 = vst.msk [vmem:[%s374_s1 + $0xa] sm:$0xff] %vm145_vm4, %v121_v28 }
  0x89   :  { %v65_v29 = vpop.permute.xlu1 %64  ;;  %v63_v30 = vpop.permute.xlu0 %62 }
  0x8a   :  { %v108_v31 = vsel %vm102_vm2, 0.0, %v65_v29  ;;  %v107_v32 = vsel %vm102_vm2, 0.0, %v63_v30 }
  0x8b   :  { %v125_v33 = vsel %vm119_vm3, %v108_v31, 0.0  ;;  %v124_v34 = vsel %vm119_vm3, %v107_v32, 0.0 }
  0x8c   :  { %151 = vst.msk [vmem:[%s374_s1 + $0x3a] sm:$0xff] %vm145_vm4, %v125_v33  ;;  %150 = vst.msk [vmem:[%s374_s1 + $0x32] sm:$0xff] %vm145_vm4, %v124_v34 }
  0x8d   :  { %v69_v35 = vpop.permute.xlu1 %68  ;;  %v67_v36 = vpop.permute.xlu0 %66 }
  0x8e   :  { %v110_v37 = vsel %vm102_vm2, 0.0, %v69_v35  ;;  %v109_v38 = vsel %vm102_vm2, 0.0, %v67_v36 }
  0x8f   :  { %v127_v39 = vsel %vm119_vm3, %v110_v37, 0.0  ;;  %v126_v40 = vsel %vm119_vm3, %v109_v38, 0.0 }
  0x90   :  { %153 = vst.msk [vmem:[%s374_s1 + $0x52] sm:$0xff] %vm145_vm4, %v127_v39  ;;  %152 = vst.msk [vmem:[%s374_s1 + $0x4a] sm:$0xff] %vm145_vm4, %v126_v40 }
  0x91   :  { %v73_v41 = vpop.permute.xlu1 %72  ;;  %v71_v42 = vpop.permute.xlu0 %70 }
  0x92   :  { %v112_v43 = vsel %vm102_vm2, 0.0, %v73_v41  ;;  %v111_v44 = vsel %vm102_vm2, 0.0, %v71_v42 }
  0x93   :  { %v129_v45 = vsel %vm119_vm3, %v112_v43, 0.0  ;;  %v128_v46 = vsel %vm119_vm3, %v111_v44, 0.0 }
  0x94   :  { %155 = vst.msk [vmem:[%s374_s1 + $0x6a] sm:$0xff] %vm145_vm4, %v129_v45  ;;  %154 = vst.msk [vmem:[%s374_s1 + $0x62] sm:$0xff] %vm145_vm4, %v128_v46 }
  0x95   :  { %v77_v47 = vpop.permute.xlu1 %76  ;;  %v75_v48 = vpop.permute.xlu0 %74 }
  0x96   :  { %v114_v49 = vsel %vm102_vm2, 0.0, %v77_v47  ;;  %v113_v50 = vsel %vm102_vm2, 0.0, %v75_v48 }
  0x97   :  { %v131_v51 = vsel %vm119_vm3, %v114_v49, 0.0  ;;  %v130_v52 = vsel %vm119_vm3, %v113_v50, 0.0 }
  0x98   :  { %157 = vst.msk [vmem:[%s374_s1 + $0x82] sm:$0xff] %vm145_vm4, %v131_v51  ;;  %156 = vst.msk [vmem:[%s374_s1 + $0x7a] sm:$0xff] %vm145_vm4, %v130_v52 }
  0x99   :  { %v81_v53 = vpop.permute.xlu1 %80  ;;  %v79_v54 = vpop.permute.xlu0 %78 }
  0x9a   :  { %v116_v55 = vsel %vm102_vm2, 0.0, %v81_v53  ;;  %v115_v56 = vsel %vm102_vm2, 0.0, %v79_v54 }
  0x9b   :  { %v133_v57 = vsel %vm119_vm3, %v116_v55, 0.0  ;;  %v132_v58 = vsel %vm119_vm3, %v115_v56, 0.0 }
  0x9c   :  { %159 = vst.msk [vmem:[%s374_s1 + $0x9a] sm:$0xff] %vm145_vm4, %v133_v57  ;;  %158 = vst.msk [vmem:[%s374_s1 + $0x92] sm:$0xff] %vm145_vm4, %v132_v58 }
  0x9d   :  { %v85_v59 = vpop.permute.xlu1 %84  ;;  %v83_v60 = vpop.permute.xlu0 %82 }
  0x9e   :  { %v118_v61 = vsel %vm102_vm2, 0.0, %v85_v59  ;;  %v117_v62 = vsel %vm102_vm2, 0.0, %v83_v60 }
  0x9f   :  { %v135_v63 = vsel %vm119_vm3, %v118_v61, 0.0  ;;  %v134_v0 = vsel %vm119_vm3, %v117_v62, 0.0 }
  0xa0   :  { %161 = vst.msk [vmem:[%s374_s1 + $0xb2] sm:$0xff] %vm145_vm4, %v135_v63  ;;  %160 = vst.msk [vmem:[%s374_s1 + $0xaa] sm:$0xff] %vm145_vm4, %v134_v0 }
  0xa1   :  { %175 = vsyncpa [#allocation3], 1 }

</bundles_post_ra>
